<compile_context>
chip_gen: v7x
topology: tpu7x:2x2x1
jax: 0.10.0
libtpu: 0.0.40
codegen_flags: <defaults>
</compile_context>

<pallas_src>
import functools

import jax
import jax.numpy as jnp
from jax.experimental import pallas as pl
from jax.experimental.pallas import tpu as pltpu


def _round_up(x, m):
    return (x + m - 1) // m * m


def mlp_kernel(x_ref, w1_ref, b1_ref, w2_ref, b2_ref, w3_ref, b3_ref, o_ref):
    """Fused 3-Linear MLP forward for one batch tile.

    x_ref : (TB, F_in)
    w*_ref: (in_l, out_l)   full weight matrices resident in VMEM
    b*_ref: (1, out_l)      bias rows (lane broadcast)
    o_ref : (TB, F_out)     unpadded output tile (last dim == true F_out)
    """
    x = x_ref[...]

    # layer 0: Linear + ReLU   (f32 accumulate, f32 epilogue)
    h = jnp.dot(x, w1_ref[...], preferred_element_type=jnp.float32)
    h = jnp.maximum(h + b1_ref[...], 0.0)

    # layer 1: Linear + Tanh
    h = jnp.dot(h, w2_ref[...], preferred_element_type=jnp.float32)
    h = jnp.tanh(h + b2_ref[...])

    # output layer: Linear (no final ReLU since relu=False)
    y = jnp.dot(h, w3_ref[...], preferred_element_type=jnp.float32)
    y = y + b3_ref[...]

    o_ref[...] = y.astype(o_ref.dtype)


@functools.partial(jax.jit, static_argnames=("max_tile_b", "min_grid_steps"))
def mlp_forward(x, w1, b1, w2, b2, w3, b3, *, max_tile_b=2048, min_grid_steps=4):
    B, F_in = x.shape
    H1 = w1.shape[1]
    H2 = w2.shape[1]
    F_out = w3.shape[1]

    # ---- batch tiling ------------------------------------------------------
    # Tiny batches: a single grid step (latency path).
    # Larger batches: aim for >= min_grid_steps steps (so v7x's two TensorCores
    # both get work via the "parallel" grid axis) while capping the tile at
    # max_tile_b rows. At f32 with 128-lane-padded VMEM tiles this is roughly
    # 3.5-4 KiB/row including double buffering, i.e. ~7-8 MiB at tile_b=2048 —
    # under v5e's 16 MiB scoped-VMEM default and v6e/v7x's 32 MiB.
    if B <= 256:
        tile_b = _round_up(max(B, 1), 8)
    else:
        tile_b = min(max_tile_b, _round_up(pl.cdiv(B, min_grid_steps), 8))
    grid = (pl.cdiv(B, tile_b),)   # ragged last block handled by Pallas masking

    # biases as (1, out) rows for clean lane-broadcast inside the kernel
    b1r = b1.reshape(1, H1)
    b2r = b2.reshape(1, H2)
    b3r = b3.reshape(1, F_out)

    # advisory cost estimate (real dims, not padded) so XLA schedules neighbors
    flops = 2 * B * (F_in * H1 + H1 * H2 + H2 * F_out)
    bytes_accessed = 4 * (B * F_in + F_in * H1 + H1 + H1 * H2 + H2
                          + H2 * F_out + F_out + B * F_out)
    cost = pl.CostEstimate(flops=flops, transcendentals=B * H2,
                           bytes_accessed=bytes_accessed)

    full = lambda i: (0, 0)  # weights/biases: same full block for every grid step

    out = pl.pallas_call(
        mlp_kernel,
        out_shape=jax.ShapeDtypeStruct((B, F_out), x.dtype),
        grid_spec=pltpu.PrefetchScalarGridSpec(
            num_scalar_prefetch=0,
            grid=grid,
            in_specs=[
                pl.BlockSpec((tile_b, F_in), lambda i: (i, 0)),  # x tile
                pl.BlockSpec((F_in, H1), full),                  # W1
                pl.BlockSpec((1, H1), full),                     # b1
                pl.BlockSpec((H1, H2), full),                    # W2
                pl.BlockSpec((1, H2), full),                     # b2
                pl.BlockSpec((H2, F_out), full),                 # W3
                pl.BlockSpec((1, F_out), full),                  # b3
            ],
            out_specs=pl.BlockSpec((tile_b, F_out), lambda i: (i, 0)),
        ),
        compiler_params=pltpu.CompilerParams(
            dimension_semantics=("parallel",)   # megacore-shardable on v7x
        ),
        cost_estimate=cost,
    )(x, w1, b1r, w2, b2r, w3, b3r)

    return out


def init_mlp_params(key, input_size, hidden_sizes, output_size, dtype=jnp.float32):
    """Mirror MLP.init_weights: W ~ N(0, 1/sqrt(in_features)), b = 0.
    Weights stored as [in, out] (transposed vs. torch's [out, in])."""
    sizes = [input_size] + list(hidden_sizes) + [output_size]
    params = []
    for i in range(len(sizes) - 1):
        key, sub = jax.random.split(key)
        fan_in, fan_out = sizes[i], sizes[i + 1]
        w = (jax.random.normal(sub, (fan_in, fan_out), dtype=jnp.float32)
             / jnp.sqrt(jnp.float32(fan_in))).astype(dtype)
        b = jnp.zeros((fan_out,), dtype=dtype)
        params.append((w, b))
    return params


def mlp_reference(x, params):
    """Pure-JAX reference of the same forward (for verification)."""
    (w1, b1), (w2, b2), (w3, b3) = params
    h = jnp.maximum(x @ w1 + b1, 0.0)   # Linear + ReLU
    h = jnp.tanh(h @ w2 + b2)           # Linear + Tanh
    return h @ w3 + b3                  # final Linear (relu=False)


if __name__ == "__main__":
    # Config implied by _create_mlp_from_config:
    #   n_layers=2, n_units_l0=32 ('ReLU'), n_units_l1=32 ('Tanh'), output Linear
    # TODO(synk): nn.Dropout branches of the config are identity in forward/eval
    # and are intentionally not modeled.
    input_size = 16
    hidden_sizes = (32, 32)
    output_size = 8
    batch = 16

    key = jax.random.PRNGKey(0)
    key, xkey = jax.random.split(key)
    x = jax.random.normal(xkey, (batch, input_size), dtype=jnp.float32)

    params = init_mlp_params(key, input_size, hidden_sizes, output_size)
    (w1, b1), (w2, b2), (w3, b3) = params

    # small batch: single grid step, partial-free tile
    y = jax.block_until_ready(mlp_forward(x, w1, b1, w2, b2, w3, b3))
    y_ref = mlp_reference(x, params)
    assert y.shape == (batch, output_size)
    assert jnp.allclose(y, y_ref, atol=1e-5, rtol=1e-5), "Pallas kernel mismatch vs reference"

    # ragged small batch: exercises the masked (partial) edge block
    xa = jax.random.normal(jax.random.PRNGKey(1), (37, input_size), dtype=jnp.float32)
    ya = jax.block_until_ready(mlp_forward(xa, w1, b1, w2, b2, w3, b3))
    assert ya.shape == (37, output_size)
    assert jnp.allclose(ya, mlp_reference(xa, params), atol=1e-5, rtol=1e-5)

    # larger ragged batch: multi-step "parallel" grid + partial last block
    xb = jax.random.normal(jax.random.PRNGKey(2), (1000, input_size), dtype=jnp.float32)
    yb = jax.block_until_ready(mlp_forward(xb, w1, b1, w2, b2, w3, b3))
    assert yb.shape == (1000, output_size)
    assert jnp.allclose(yb, mlp_reference(xb, params), atol=1e-5, rtol=1e-5)

    print("KERNEL_OK")
</pallas_src>

<mosaic_0001>
module attributes {stable_mosaic.version = 11 : i64} {
  func.func @mlp_kernel(%arg0: i32, %arg1: memref<16x16xf32, #tpu.memory_space<vmem>>, %arg2: memref<16x32xf32, #tpu.memory_space<vmem>>, %arg3: memref<1x32xf32, #tpu.memory_space<vmem>>, %arg4: memref<32x32xf32, #tpu.memory_space<vmem>>, %arg5: memref<1x32xf32, #tpu.memory_space<vmem>>, %arg6: memref<32x8xf32, #tpu.memory_space<vmem>>, %arg7: memref<1x8xf32, #tpu.memory_space<vmem>>, %arg8: memref<16x8xf32, #tpu.memory_space<vmem>>) attributes {dimension_semantics = [#tpu.dimension_semantics<parallel>], iteration_bounds = array<i64: 1>, scalar_prefetch = 0 : i64, scratch_operands = 0 : i64, tpu.core_type = #tpu.core_type<tc>, window_params = [{transform_indices = @transform_0, window_bounds = array<i64: 16, 16>}, {pipeline_mode = #tpu.pipeline_mode<synchronous>, transform_indices = @transform_1, window_bounds = array<i64: 16, 32>}, {pipeline_mode = #tpu.pipeline_mode<synchronous>, transform_indices = @transform_2, window_bounds = array<i64: 1, 32>}, {pipeline_mode = #tpu.pipeline_mode<synchronous>, transform_indices = @transform_3, window_bounds = array<i64: 32, 32>}, {pipeline_mode = #tpu.pipeline_mode<synchronous>, transform_indices = @transform_4, window_bounds = array<i64: 1, 32>}, {pipeline_mode = #tpu.pipeline_mode<synchronous>, transform_indices = @transform_5, window_bounds = array<i64: 32, 8>}, {pipeline_mode = #tpu.pipeline_mode<synchronous>, transform_indices = @transform_6, window_bounds = array<i64: 1, 8>}, {transform_indices = @transform_7, window_bounds = array<i64: 16, 8>}]} {
    %c0 = arith.constant 0 : index
    %c0_0 = arith.constant 0 : index
    %0 = vector.load %arg1[%c0, %c0_0] : memref<16x16xf32, #tpu.memory_space<vmem>>, vector<16x16xf32>
    %c0_1 = arith.constant 0 : index
    %c0_2 = arith.constant 0 : index
    %1 = vector.load %arg2[%c0_1, %c0_2] : memref<16x32xf32, #tpu.memory_space<vmem>>, vector<16x32xf32>
    %cst = arith.constant dense<0.000000e+00> : vector<16x32xf32>
    %2 = tpu.matmul %0, %1, %cst {dimension_numbers = #tpu.dot_dimension_numbers<[1], [0], [0], [1], [0, 0, 1, 1], [], []>} : vector<16x16xf32>, vector<16x32xf32>, vector<16x32xf32> -> vector<16x32xf32>
    %c0_3 = arith.constant 0 : index
    %c0_4 = arith.constant 0 : index
    %3 = vector.load %arg3[%c0_3, %c0_4] : memref<1x32xf32, #tpu.memory_space<vmem>>, vector<1x32xf32>
    %4 = vector.broadcast %3 : vector<1x32xf32> to vector<16x32xf32>
    %5 = arith.addf %2, %4 : vector<16x32xf32>
    %cst_5 = arith.constant 0.000000e+00 : f32
    %6 = vector.broadcast %cst_5 : f32 to vector<16x32xf32>
    %7 = arith.maximumf %5, %6 : vector<16x32xf32>
    %c0_6 = arith.constant 0 : index
    %c0_7 = arith.constant 0 : index
    %8 = vector.load %arg4[%c0_6, %c0_7] : memref<32x32xf32, #tpu.memory_space<vmem>>, vector<32x32xf32>
    %cst_8 = arith.constant dense<0.000000e+00> : vector<16x32xf32>
    %9 = tpu.matmul %7, %8, %cst_8 {dimension_numbers = #tpu.dot_dimension_numbers<[1], [0], [0], [1], [0, 0, 1, 1], [], []>} : vector<16x32xf32>, vector<32x32xf32>, vector<16x32xf32> -> vector<16x32xf32>
    %c0_9 = arith.constant 0 : index
    %c0_10 = arith.constant 0 : index
    %10 = vector.load %arg5[%c0_9, %c0_10] : memref<1x32xf32, #tpu.memory_space<vmem>>, vector<1x32xf32>
    %11 = vector.broadcast %10 : vector<1x32xf32> to vector<16x32xf32>
    %12 = arith.addf %9, %11 : vector<16x32xf32>
    %13 = math.tanh %12 : vector<16x32xf32>
    %c0_11 = arith.constant 0 : index
    %c0_12 = arith.constant 0 : index
    %14 = vector.load %arg6[%c0_11, %c0_12] : memref<32x8xf32, #tpu.memory_space<vmem>>, vector<32x8xf32>
    %cst_13 = arith.constant dense<0.000000e+00> : vector<16x8xf32>
    %15 = tpu.matmul %13, %14, %cst_13 {dimension_numbers = #tpu.dot_dimension_numbers<[1], [0], [0], [1], [0, 0, 1, 1], [], []>} : vector<16x32xf32>, vector<32x8xf32>, vector<16x8xf32> -> vector<16x8xf32>
    %c0_14 = arith.constant 0 : index
    %c0_15 = arith.constant 0 : index
    %16 = vector.load %arg7[%c0_14, %c0_15] : memref<1x8xf32, #tpu.memory_space<vmem>>, vector<1x8xf32>
    %17 = vector.broadcast %16 : vector<1x8xf32> to vector<16x8xf32>
    %18 = arith.addf %15, %17 : vector<16x8xf32>
    %c0_16 = arith.constant 0 : index
    %c0_17 = arith.constant 0 : index
    %19 = vector.load %arg8[%c0_16, %c0_17] : memref<16x8xf32, #tpu.memory_space<vmem>>, vector<16x8xf32>
    tpu.vector_store %arg8[%c0_16, %c0_17], %18 {strides = array<i32>} : memref<16x8xf32, #tpu.memory_space<vmem>>, vector<16x8xf32>,
    return
  }
  func.func @transform_0(%arg0: i32) -> (i32, i32) {
    %c0_i32 = arith.constant 0 : i32
    %c0_i32_0 = arith.constant 0 : i32
    return %arg0, %c0_i32 : i32, i32
  }
  func.func @transform_1(%arg0: i32) -> (i32, i32) {
    %c0_i32 = arith.constant 0 : i32
    %c0_i32_0 = arith.constant 0 : i32
    %c0_i32_1 = arith.constant 0 : i32
    return %c0_i32, %c0_i32_0 : i32, i32
  }
  func.func @transform_2(%arg0: i32) -> (i32, i32) {
    %c0_i32 = arith.constant 0 : i32
    %c0_i32_0 = arith.constant 0 : i32
    %c0_i32_1 = arith.constant 0 : i32
    return %c0_i32, %c0_i32_0 : i32, i32
  }
  func.func @transform_3(%arg0: i32) -> (i32, i32) {
    %c0_i32 = arith.constant 0 : i32
    %c0_i32_0 = arith.constant 0 : i32
    %c0_i32_1 = arith.constant 0 : i32
    return %c0_i32, %c0_i32_0 : i32, i32
  }
  func.func @transform_4(%arg0: i32) -> (i32, i32) {
    %c0_i32 = arith.constant 0 : i32
    %c0_i32_0 = arith.constant 0 : i32
    %c0_i32_1 = arith.constant 0 : i32
    return %c0_i32, %c0_i32_0 : i32, i32
  }
  func.func @transform_5(%arg0: i32) -> (i32, i32) {
    %c0_i32 = arith.constant 0 : i32
    %c0_i32_0 = arith.constant 0 : i32
    %c0_i32_1 = arith.constant 0 : i32
    return %c0_i32, %c0_i32_0 : i32, i32
  }
  func.func @transform_6(%arg0: i32) -> (i32, i32) {
    %c0_i32 = arith.constant 0 : i32
    %c0_i32_0 = arith.constant 0 : i32
    %c0_i32_1 = arith.constant 0 : i32
    return %c0_i32, %c0_i32_0 : i32, i32
  }
  func.func @transform_7(%arg0: i32) -> (i32, i32) {
    %c0_i32 = arith.constant 0 : i32
    %c0_i32_0 = arith.constant 0 : i32
    return %arg0, %c0_i32 : i32, i32
  }
}

</mosaic_0001>

<bundles_post_ra>
// kernel: mlp_forward.1
= control target key start
LH: loop header
LB: loop body
LE: loop exit
PB: predicated region body
PF: predicated region fallthrough
CT: control target
= control target key end

     0   :  { %12 = vsyncpa [#allocation3], 0  ;;  %s435_s24 = smov [#allocation2]   ;;  %s539_s0 = inlined_call_operand.vmem [shape: f32[16,16], index: 0, kind: input, shape index: {}]   ;;  %s540_s1 = inlined_call_operand.hbm [shape: f32[16,32], index: 1, kind: input, shape index: {}]   ;;  %s541_s2 = inlined_call_operand.vmem [shape: f32[1,32], index: 2, kind: input, shape index: {}]   ;;  %s542_s3 = inlined_call_operand.vmem [shape: f32[32,32], index: 3, kind: input, shape index: {}]   ;;  %s543_s4 = inlined_call_operand.vmem [shape: f32[1,32], index: 4, kind: input, shape index: {}]   ;;  %s544_s5 = inlined_call_operand.vmem [shape: f32[32,8], index: 5, kind: input, shape index: {}]   ;;  %s545_s6 = inlined_call_operand.vmem [shape: f32[1,8], index: 6, kind: input, shape index: {}]   ;;  %s546_s7 = inlined_call_operand.vmem [shape: f32[16,8], index: 7, kind: output, shape index: {}]  }
   0x1   :  { %s20_s25 = sshll.u32 %s435_s24, 4  ;;  %s411_s28 = scalar_lea.hbm %s540_s1, 256  ;;  %s21_s25 = int_to_ptr.vmem [resolvable:$true] %s20_s25 }
   0x2   :  { %p412_p0 = scmp.ne.s32.totalorder %s540_s1, %s411_s28  ;;  %p415_p1 = scmp.lt.u32.totalorder %s411_s28, %s540_s1 }
   0x4   :  { %p417_p2 = pnand %p415_p1, %p412_p0 }
   0x6   :  { %420 = shalt.err (!%p417_p2)
}
   0x7   :  { %s421_s10 = scalar_lea.vmem %s21_s25, 256  ;;  %p426_p4 = scmp.lt.s32.totalorder %s21_s25, %s21_s25 }
   0x8   :  { %p422_p3 = scmp.ne.s32.totalorder %s21_s25, %s421_s10  ;;  %p427_p5 = scmp.lt.s32.totalorder %s421_s10, %s421_s10 }
   0xa   :  { %p428_p6 = por %p427_p5, %p426_p4 }
   0xc   :  { %p429_p7 = pnand %p428_p6, %p422_p3 }
   0xe   :  { %432 = shalt.err (!%p429_p7)
}
   0xf   :  { %s436_s11 = smov 128   ;;  %s437_s12 = smov 8  }
  0x10   :  { %26 = dma.hbm_to_vmem [thread:$0]  %s540_s1, 256, %s21_s25, [#allocation3], %s436_s11, %s436_s11, %s437_s12  }
  0x11   :  { %433 = dma.done.wait [#allocation3], 256  }
  0x12   :  { %434 = vsyncadd [#allocation3], 4294967040  ;;  %vm51_vm0 = vcmask 130048   ;;  %v42_v0 = vld [vmem:[#allocation2] sm:$0xff]  ;;  %v43_v1 = vld [vmem:[#allocation2 + $0x8] sm:$0xff]  ;;  %vm146_vm1 = vcmask 261120  }
  0x13   :  { %v40_v2 = vld [vmem:[%s539_s0] sm:$0xff]  ;;  %v384_v3 = vpack.c.bf16 %v43_v1, %v42_v0  ;;  %v136_v5 = vld [vmem:[%s542_s3 + $0x8] sm:$0xff]  ;;  %v137_v8 = vld [vmem:[%s542_s3 + $0x10] sm:$0xff]  ;;  %vm322_vm2 = vcmask 64512  }
  0x14   :  { %359 = vmatprep.mubr.msk.f32.mxu0 %vm51_vm0, %v40_v2  ;;  %v135_v4 = vld [vmem:[%s542_s3] sm:$0xff]  ;;  %v41_v7 = vld [vmem:[%s539_s0 + $0x8] sm:$0xff]  ;;  %v138_v9 = vld [vmem:[%s542_s3 + $0x18] sm:$0xff] }
  0x15   :  { %v388_v6 = vpack.c.bf16 %v136_v5, %v135_v4  ;;  %385 = vmatprep.subr.bf16.mxu0 %v384_v3  ;;  %v392_v10 = vpack.c.bf16 %v138_v9, %v137_v8  ;;  %v330_v11 = vld [vmem:[%s541_s2] ss:$0 sm:$0xff]  ;;  %v231_v19 = vld [vmem:[%s544_s5 + $0x8] sm:$0xff]  ;;  %v232_v20 = vld [vmem:[%s544_s5 + $0x10] sm:$0xff] }
  0x16   :  { %387 = vmatpush3.bf16.msra.mxu0 %v384_v3  ;;  %v230_v18 = vld [vmem:[%s544_s5] sm:$0xff]  ;;  %v233_v22 = vld [vmem:[%s544_s5 + $0x18] sm:$0xff] }
  0x17   :  { %389 = vmatprep.subr.bf16.mxu1 %v388_v6  ;;  %v396_v21 = vpack.c.bf16 %v231_v19, %v230_v18  ;;  %v400_v23 = vpack.c.bf16 %v233_v22, %v232_v20  ;;  %v333_v24 = vld [vmem:[%s543_s4] ss:$0 sm:$0xff] }
  0x18   :  { %391 = vmatpush3.bf16.msra.mxu1 %v388_v6  ;;  %v336_v31 = vld [vmem:[%s545_s6] ss:$0 sm:$0xff] }
  0x19   :  { %360 = vmatmul.mubr.msk.f32.vlgmr.msra.gmra.mrb[0].mxu0 %vm51_vm0, %v41_v7  ;;  %393 = vmatprep.subr.bf16.mxu1 %v392_v10 }
  0x1a   :  { %397 = vmatprep.subr.bf16.mxu0 %v396_v21 }
  0x1b   :  { %399 = vmatpush3.bf16.msra.mxu0 %v396_v21 }
  0x1c   :  { %395 = vmatpush3.bf16.msra.mxu1 %v392_v10  ;;  %401 = vmatprep.subr.bf16.mxu0 %v400_v23 }
  0x1f   :  { %403 = vmatpush3.bf16.msra.mxu0 %v400_v23 }
  0xec   :  { %v361_v12 = vpop.f32.mrb[0].mxu0 }
  0xed   :  { %v130_v13 = vadd.f32 %v361_v12, %v330_v11  ;;  %v124_v14 = vpop.f32.mrb[1].mxu0 }
  0xee   :  { %v125_v15 = vadd.f32 %v330_v11, %v124_v14 }
  0xef   :  { %v134_v17 = vmax.f32 %v130_v13, 0.0 }
  0xf0   :  { %v133_v16 = vmax.f32 %v125_v15, 0.0 }
  0xf2   :  { %370 = vmatprep.mubr.msk.f32.mxu1 %vm146_vm1, %v133_v16 }
  0xf3   :  { %371 = vmatmul.mubr.msk.f32.vlgmr.msra.gmra.mrb[0].mxu1 %vm146_vm1, %v134_v17 }
 0x1c6   :  { %v372_v25 = vpop.f32.mrb[0].mxu1 }
 0x1c7   :  { %v225_v26 = vadd.f32 %v372_v25, %v333_v24  ;;  %v219_v27 = vpop.f32.mrb[1].mxu1 }
 0x1c8   :  { %v220_v28 = vadd.f32 %v333_v24, %v219_v27 }
 0x1ca   :  { %407 = vtanh.f32 %v220_v28 }
 0x1cb   :  { %409 = vtanh.f32 %v225_v26 }
 0x1d4   :  { %v408_v29 = vpop.eup %407 }
 0x1d5   :  { %v410_v30 = vpop.eup %409  ;;  %381 = vmatprep.mubr.msk.f32.mxu0 %vm146_vm1, %v408_v29 }
 0x1d6   :  { %382 = vmatmul.mubr.msk.f32.vlgmr.msra.gmra.mrb[2].mxu0 %vm146_vm1, %v410_v30 }
 0x2a9   :  { %v383_v32 = vpop.f32.mrb[2].mxu0 }
 0x2aa   :  { %v319_v33 = vadd.f32 %v383_v32, %v336_v31  ;;  %v313_v34 = vpop.f32.mrb[3].mxu0 }
 0x2ab   :  { %v314_v35 = vadd.f32 %v336_v31, %v313_v34 }
 0x2ac   :  { %324 = vst.msk [vmem:[%s546_s7 + $0x8] sm:$0xff] %vm322_vm2, %v319_v33 }
 0x2ad   :  { %323 = vst.msk [vmem:[%s546_s7] sm:$0xff] %vm322_vm2, %v314_v35 }
 0x2ae   :  { %329 = vsyncpa [#allocation3], 1 }

</bundles_post_ra>
